<compile_context>
chip_gen: v5e
topology: v5e:2x2
jax: 0.10.0
libtpu: 0.0.40
codegen_flags: <defaults>
</compile_context>

<pallas_src>
import jax
import jax.numpy as jnp
from jax.experimental import pallas as pl
from jax.experimental.pallas import tpu as pltpu


def _pos_embed_kernel(x_ref, w_ref, o_ref):
    # x_ref: (TB, P, D) block of batch elements
    # w_ref: (P, D)     full position-embedding table (broadcast over batch)
    # o_ref: (TB, P, D)
    o_ref[...] = (x_ref[...] + w_ref[...]).astype(o_ref.dtype)


def pos_embed_pallas(x, weight, *, vmem_budget_bytes=36 * 1024 * 1024):
    """out = x + weight.  x: (B, P, D), weight: (P, D)."""
    B, P, D = x.shape
    assert weight.shape == (P, D), "weight must be (num_patches, dim)"

    # Match Torch's add_ promotion-free behavior: do the add in x's dtype.
    if weight.dtype != x.dtype:
        weight = weight.astype(x.dtype)

    itemsize = jnp.dtype(x.dtype).itemsize
    block_elem_bytes = P * D * itemsize          # one batch element's slab
    weight_bytes = P * D * itemsize

    # VMEM budget: 2x double-buffered x block + 2x double-buffered out block
    # (= 4 * TB * block) + (conservatively) 2x weight buffer.  Budget chosen
    # to fit v7x's 64 MiB physical VMEM with headroom; v5e/v6e (128 MiB) have
    # plenty of room for the same setting.
    avail = max(vmem_budget_bytes - 2 * weight_bytes, block_elem_bytes)
    tb = max(1, min(B, avail // (4 * block_elem_bytes)))

    # Keep >= 2 grid steps when batch allows, so the parallel axis shards
    # across both v7x TensorCores instead of leaving one idle.
    if B >= 2 and -(-B // tb) < 2:               # cdiv(B, tb) == 1
        tb = -(-B // 2)                          # cdiv(B, 2)

    # Prefer a TB that divides B (avoids a ragged final block); fall back to
    # the computed TB (Pallas masks the partial edge block correctly).
    for cand in range(tb, 0, -1):
        if B % cand == 0:
            tb = cand
            break

    num_b_tiles = pl.cdiv(B, tb)
    grid = (num_b_tiles,)

    bytes_accessed = 2 * B * P * D * itemsize + weight_bytes  # read x + write out + read w
    cost = pl.CostEstimate(flops=B * P * D, transcendentals=0,
                           bytes_accessed=bytes_accessed)

    out = pl.pallas_call(
        _pos_embed_kernel,
        out_shape=jax.ShapeDtypeStruct((B, P, D), x.dtype),
        grid_spec=pltpu.PrefetchScalarGridSpec(
            num_scalar_prefetch=0,
            grid=grid,
            in_specs=[
                # x: TB batch elements, full patch axis, full (lane-dense) dim.
                pl.BlockSpec((tb, P, D), lambda b: (b, 0, 0)),
                # weight: constant block index -> DMA'd exactly once per call.
                pl.BlockSpec((P, D), lambda b: (0, 0)),
            ],
            out_specs=pl.BlockSpec((tb, P, D), lambda b: (b, 0, 0)),
        ),
        compiler_params=pltpu.CompilerParams(
            dimension_semantics=("parallel",),
            # Raise the scoped VMEM limit above v5e/v6e defaults but stay
            # safely under v7x's 64 MiB physical VMEM.
            vmem_limit_bytes=52 * 1024 * 1024,
        ),
        cost_estimate=cost,
        # In-place semantics like Torch's x.add_(); with donated x this avoids
        # a separate output allocation, otherwise XLA inserts a copy.
        input_output_aliases={0: 0},
    )(x, weight)

    return out


def _reference_pos_embed(x, weight):
    return x + weight[None, :, :].astype(x.dtype)


if __name__ == "__main__":
    # Small ViT-like shapes: batch=4, num_patches=16, dim=128 (lane-dense),
    # so the batch-blocked grid actually exercises TB > 1 with 2 grid steps.
    batch, num_patches, dim = 4, 16, 128

    key = jax.random.PRNGKey(0)
    kx, kw = jax.random.split(key)

    x = jax.random.normal(kx, (batch, num_patches, dim), dtype=jnp.float32)
    # nn.init.normal_(std=0.02) equivalent.
    weight = 0.02 * jax.random.normal(kw, (num_patches, dim), dtype=jnp.float32)

    ref = _reference_pos_embed(x, weight)

    pos_embed = jax.jit(pos_embed_pallas)
    out = pos_embed(x, weight)
    out = jax.block_until_ready(out)

    assert out.shape == x.shape
    assert jnp.allclose(out, ref, atol=1e-6, rtol=1e-6), "mismatch vs reference"

    print("KERNEL_OK")
</pallas_src>

<mosaic_0001>
module attributes {stable_mosaic.version = 11 : i64} {
  func.func @_pos_embed_kernel(%arg0: i32, %arg1: memref<2x16x128xf32, #tpu.memory_space<vmem>>, %arg2: memref<16x128xf32, #tpu.memory_space<vmem>>, %arg3: memref<2x16x128xf32, #tpu.memory_space<vmem>>) attributes {dimension_semantics = [#tpu.dimension_semantics<parallel>], iteration_bounds = array<i64: 2>, scalar_prefetch = 0 : i64, scratch_operands = 0 : i64, tpu.core_type = #tpu.core_type<tc>, window_params = [{transform_indices = @transform_0, window_bounds = array<i64: 2, 16, 128>}, {pipeline_mode = #tpu.pipeline_mode<synchronous>, transform_indices = @transform_1, window_bounds = array<i64: 16, 128>}, {transform_indices = @transform_2, window_bounds = array<i64: 2, 16, 128>}]} {
    %c0 = arith.constant 0 : index
    %c0_0 = arith.constant 0 : index
    %c0_1 = arith.constant 0 : index
    %0 = vector.load %arg1[%c0, %c0_0, %c0_1] : memref<2x16x128xf32, #tpu.memory_space<vmem>>, vector<2x16x128xf32>
    %c0_2 = arith.constant 0 : index
    %c0_3 = arith.constant 0 : index
    %1 = vector.load %arg2[%c0_2, %c0_3] : memref<16x128xf32, #tpu.memory_space<vmem>>, vector<16x128xf32>
    %2 = vector.shape_cast %1 : vector<16x128xf32> to vector<1x16x128xf32>
    %3 = vector.broadcast %2 : vector<1x16x128xf32> to vector<2x16x128xf32>
    %4 = arith.addf %0, %3 : vector<2x16x128xf32>
    %c0_4 = arith.constant 0 : index
    %c0_5 = arith.constant 0 : index
    %c0_6 = arith.constant 0 : index
    %5 = vector.load %arg3[%c0_4, %c0_5, %c0_6] : memref<2x16x128xf32, #tpu.memory_space<vmem>>, vector<2x16x128xf32>
    tpu.vector_store %arg3[%c0_4, %c0_5, %c0_6], %4 {strides = array<i32>} : memref<2x16x128xf32, #tpu.memory_space<vmem>>, vector<2x16x128xf32>,
    return
  }
  func.func @transform_0(%arg0: i32) -> (i32, i32, i32) {
    %c0_i32 = arith.constant 0 : i32
    %c0_i32_0 = arith.constant 0 : i32
    %c0_i32_1 = arith.constant 0 : i32
    return %arg0, %c0_i32, %c0_i32_0 : i32, i32, i32
  }
  func.func @transform_1(%arg0: i32) -> (i32, i32) {
    %c0_i32 = arith.constant 0 : i32
    %c0_i32_0 = arith.constant 0 : i32
    %c0_i32_1 = arith.constant 0 : i32
    return %c0_i32, %c0_i32_0 : i32, i32
  }
  func.func @transform_2(%arg0: i32) -> (i32, i32, i32) {
    %c0_i32 = arith.constant 0 : i32
    %c0_i32_0 = arith.constant 0 : i32
    %c0_i32_1 = arith.constant 0 : i32
    return %arg0, %c0_i32, %c0_i32_0 : i32, i32, i32
  }
}

</mosaic_0001>

<bundles_post_ra>
// kernel: pos_embed_pallas.1
= control target key start
LH: loop header
LB: loop body
LE: loop exit
PB: predicated region body
PF: predicated region fallthrough
CT: control target
= control target key end

     0   :  { %7 = vsyncpa [#allocation3], 0  ;;  %s591_s0 = inlined_call_operand.hbm [shape: f32[4,16,128], index: 0, kind: input, shape index: {}, may-alias: {0,2}]   ;;  %s592_s1 = inlined_call_operand.vmem [shape: f32[16,128], index: 1, kind: input, shape index: {}]   ;;  %s593_s2 = inlined_call_operand.hbm [shape: f32[4,16,128], index: 2, kind: output, shape index: {}, may-alias: {0,2}]  }
   0x1   :  { %9 = vsyncpa [#allocation3 + $0x1], 0 }
   0x2   :  { %10 = vsyncpa [#allocation4], 0 }
   0x3   :  { %12 = vsyncpa [#allocation4 + $0x1], 0  ;;  %s458_s9 = smov 0   ;;  %s460_s10 = smov 0  }
   0x4   :  { %s462_s11 = smov 0   ;;  %s464_s12 = smov 0  }
   0x5 LB: > { %s479_s13 = sadd.s32 4294967295, %s437_s12   ;;  %s271_s14 = sadd.s32 4294967294, %s437_s12   ;;  %s437_s12 = sphi %s464_s12, %s603_s12   ;;  %s433_s11 = sphi %s462_s11, %s602_s11   ;;  %s429_s10 = sphi %s460_s10, %s601_s10   ;;  %s425_s9 = sphi %s458_s9, %s600_s9  }
   0x6   : > { %s483_s15 = sadd.s32 1, %s437_s12   ;;  %s25_s16 = sadd.s32 1, %s433_s11 }
   0x7   : > { %s22_s17 = ssub.s32 %s437_s12, %s483_s15  ;;  %p32_p0 = scmp.ne.s32.totalorder %s433_s11, %s429_s10 }
   0x8   : > { %p23_p1 = scmp.eq.s32.totalorder %s22_s17, 0  ;;  %p33_p2 = scmp.eq.s32.totalorder %s437_s12, 0 }
   0x9   : > { %p38_p3 = scmp.ne.s32.totalorder %s429_s10, %s425_s9  ;;  %p39_p4 = scmp.eq.s32.totalorder %s479_s13, 0 }
   0xa   : > { %s495_s18 = scalar_select %p23_p1, %s433_s11, %s25_s16  }
   0xb   : > { %p497_p5 = por %p33_p2, %p32_p0  ;;  %p501_p6 = por %p39_p4, %p38_p3 }
   0xc   : > { %p83_p7 = scmp.eq.s32.totalorder %s479_s13, 1  ;;  %p89_p8 = scmp.eq.s32.totalorder %s271_s14, 1 }
   0xd   : > { %p303_p10 = scmp.lt.s32.totalorder %s437_s12, 2  ;;  %s112_s23 = sand.u32 1, %s433_s11  }
   0xe   : > { %p508_p11 = por %p83_p7, %p32_p0  ;;  %p512_p12 = por %p89_p8, %p38_p3 }
   0xf   : > { %s288_s24 = sshll.u32 %s437_s12, 5  ;;  %s274_s25 = sshll.u32 %s112_s23, 5 }
  0x10   : > { %s122_s28 = scalar_lea.hbm %s591_s0, %s288_s24  ;;  %s116_s30 = scalar_lea.vmem [#allocation2], %s274_s25 }
  0x11   : > { %s123_s29 = sshll.u32 %s122_s28, 4  ;;  %s125_s3 = sshll.u32 %s116_s30, 4  ;;  %s124_s29 = int_to_ptr.hbm [resolvable:$true] %s123_s29  ;;  %s126_s3 = int_to_ptr.vmem [resolvable:$true] %s125_s3 }
  0x12   : > { %p523_p13 = pnand %p303_p10, %p497_p5  ;;  %p278_p0 = scmp.ge.s32.totalorder %s437_s12, 1 }
  0x13   : > { %p133_p1 = scmp.lt.s32.totalorder %s437_s12, 3  ;;  %s113_s5 = scalar_lea.sflag [#allocation3], %s112_s23 }
  0x14   : > { %s341_s6 = sshra.s32 %s124_s29, 4  ;;  %p345_p3 = pneg %p523_p13  ;;  %s342_s6 = int_to_ptr.hbm [resolvable:$true] %s341_s6 }
  0x15   : > { %s343_s7 = scalar_lea.hbm %s342_s6, 32  ;;  %s348_s16 = scalar_lea.hbm %s591_s0, 64 }
  0x16   : > { %p344_p2 = scmp.ne.s32.totalorder %s342_s6, %s343_s7  ;;  %p349_p5 = scmp.lt.s32.totalorder %s342_s6, %s591_s0 }
  0x17   : > { %p350_p8 = scmp.lt.s32.totalorder %s348_s16, %s343_s7 }
  0x18   : > { %p346_p4 = pnand %p345_p3, %p344_p2 }
  0x19   : > { %p351_p10 = por %p350_p8, %p349_p5 }
  0x1a   : > { %p347_p7 = pneg %p346_p4 }
  0x1c   : > { %p352_p9 = pnand %p351_p10, %p347_p7 }
  0x1e   : > { %355 = shalt.err (!%p352_p9)
}
  0x1f   : > { %s439_s23 = smov 128   ;;  %s440_s24 = smov 8  }
  0x20   : > { %298 = dma.hbm_to_vmem [thread:$0]  (!%p523_p13), %s124_s29, 512, %s126_s3, %s113_s5, %s439_s23, %s439_s23, %s440_s24  }
  0x21   : > { %p134_p2 = pnand %p278_p0, %p133_p1 }
  0x22   : > { %s544_s25 = sand.u32 (!%p134_p2), 1, %s429_s10  }
  0x23   : > { %137 = sbr.rel (%p134_p2) target bundleno = 57 (0x39), region = 28  ;;  %s279_s26 = sshll.u32 (!%p134_p2), %s544_s25, 5 }
  0x24   : > { %s140_s27 = scalar_lea.sflag (!%p134_p2), [#allocation3], %s544_s25  ;;  %s143_s28 = scalar_lea.vmem (!%p134_p2), [#allocation2], %s279_s26 }
  0x28   : > { %416 = dma.done.wait (%p501_p6), %s140_s27, 512  }
  0x29   : > { %418 = vsyncadd (%p501_p6), %s140_s27, 4294966784  ;;  %s290_s29 = sshll.u32 %s479_s13, 5  ;;  %v167_v0 = vld [vmem:[%s143_s28] sm:$0xff]  ;;  %s164_s7 = scalar_lea.vmem [#allocation5], %s279_s26  ;;  %v168_v2 = vld [vmem:[%s143_s28 + $0x8] sm:$0xff] }
  0x2a   : > { %s194_s4 = scalar_lea.hbm %s593_s2, %s290_s29  ;;  %v171_v1 = vld [vmem:[%s592_s1] sm:$0xff]  ;;  %s195_s8 = sshll.u32 %s164_s7, 4  ;;  %v172_v4 = vld [vmem:[%s592_s1 + $0x8] sm:$0xff]  ;;  %v169_v5 = vld [vmem:[%s143_s28 + $0x10] sm:$0xff]  ;;  %s196_s8 = int_to_ptr.vmem [resolvable:$true] %s195_s8 }
  0x2b   : > { %v173_v3 = vadd.f32 %v171_v1, %v167_v0  ;;  %v170_v6 = vld [vmem:[%s143_s28 + $0x18] sm:$0xff]  ;;  %s197_s13 = sshll.u32 %s194_s4, 4  ;;  %v174_v7 = vadd.f32 %v172_v4, %v168_v2  ;;  %v175_v8 = vadd.f32 %v171_v1, %v169_v5  ;;  %s182_s20 = scalar_lea.sflag [#allocation4], %s544_s25  ;;  %s198_s13 = int_to_ptr.hbm [resolvable:$true] %s197_s13 }
  0x2c   : > { %v176_v9 = vadd.f32 %v172_v4, %v170_v6  ;;  %s385_s17 = sshra.s32 %s198_s13, 4  ;;  %s391_s26 = scalar_lea.hbm %s593_s2, 64  ;;  %s386_s17 = int_to_ptr.hbm [resolvable:$true] %s385_s17 }
  0x2d   : > { %177 = vst [vmem:[%s164_s7] sm:$0xff] %v173_v3  ;;  %s387_s19 = scalar_lea.hbm %s386_s17, 32  ;;  %p392_p0 = scmp.lt.s32.totalorder %s386_s17, %s593_s2 }
  0x2e   : > { %178 = vst [vmem:[%s164_s7 + $0x8] sm:$0xff] %v174_v7  ;;  %p388_p6 = scmp.ne.s32.totalorder %s386_s17, %s387_s19  ;;  %p393_p1 = scmp.lt.s32.totalorder %s391_s26, %s387_s19 }
  0x2f   : > { %179 = vst [vmem:[%s164_s7 + $0x10] sm:$0xff] %v175_v8 }
  0x30   : > { %180 = vst [vmem:[%s164_s7 + $0x18] sm:$0xff] %v176_v9  ;;  %p389_p9 = pnand %p388_p6, %p508_p11  ;;  %p394_p3 = por %p393_p1, %p392_p0 }
  0x32   : > { %p390_p13 = pneg %p389_p9 }
  0x34   : > { %p395_p4 = pnand %p394_p3, %p390_p13 }
  0x36   : > { %398 = shalt.err (!%p395_p4)
}
  0x37   : > { %s441_s25 = smov 128   ;;  %s442_s29 = smov 8  }
  0x38   : > { %293 = dma.vmem_to_hbm [thread:$0]  (%p508_p11), %s196_s8, 512, %s198_s13, %s182_s20, %s441_s25, %s441_s25, %s442_s29  }
  0x39 PF: > { %s212_s30 = sand.u32 1, %s425_s9   ;;  %p599_p7 = scmp.ge.s32.totalorder %s437_s12, 2 }
  0x3a   : > { %s213_s3 = scalar_lea.sflag [#allocation4], %s212_s30 }
  0x3b   : > { %p300_p5 = pnand %p599_p7, %p512_p12 }
  0x3d   : > { %p301_p8 = pneg %p300_p5 }
  0x3f   : > { %420 = dma.done.wait (%p301_p8), %s213_s3, 512  }
  0x40   : > { %422 = vsyncadd (%p301_p8), %s213_s3, 4294966784  ;;  %p15_p10 = scmp.ge.s32.totalorder %s483_s15, 4   ;;  %s600_s9 = smov %s429_s10 }
  0x41   : > { %s601_s10 = smov %s433_s11  ;;  %s602_s11 = smov %s495_s18 }
  0x42   : > { %s603_s12 = smov %s483_s15  ;;  %17 = sbr.rel (!%p15_p10) target bundleno = 5 (0x5), region = 73 }
  0x47   :  { %219 = vsyncpa [#allocation3], 1 }
  0x48   :  { %221 = vsyncpa [#allocation3 + $0x1], 1 }
  0x49   :  { %222 = vsyncpa [#allocation4], 1 }
  0x4a   :  { %224 = vsyncpa [#allocation4 + $0x1], 1 }

</bundles_post_ra>
